<compile_context>
chip_gen: v7x
topology: tpu7x:2x2x1
jax: 0.10.0
libtpu: 0.0.40
codegen_flags: <defaults>
</compile_context>

<pallas_src>
import jax
import jax.numpy as jnp
from jax.experimental import pallas as pl
from jax.experimental.pallas import tpu as pltpu


def _heads_kernel(x_ref, wb_ref, bb_ref, wc_ref, bc_ref, wd_ref, bd_ref,
                  ob_ref, oc_ref, od_ref):
    """One (C, tile_hw) activation tile -> three head outputs (cout_i, tile_hw)."""
    x = x_ref[...]  # (C, tile_hw): channels on sublanes, spatial on lanes

    def one_head(w_ref, b_ref, o_ref):
        # (cout, C) @ (C, tile_hw) on the MXU with f32 accumulation; bias add on
        # the VPU in f32, then cast to the output dtype.
        y = jnp.dot(w_ref[...], x, preferred_element_type=jnp.float32)
        o_ref[...] = (y + b_ref[...]).astype(o_ref.dtype)

    one_head(wb_ref, bb_ref, ob_ref)
    one_head(wc_ref, bc_ref, oc_ref)
    one_head(wd_ref, bd_ref, od_ref)


def fused_1x1_conv_heads(x_nchw, w_box, b_box, w_cls, b_cls, w_dir, b_dir,
                         *, max_tile_hw=2048):
    """Fused 1x1-conv heads computed directly from NCHW (no layout transpose).

    Returns three arrays shaped (N, c_box, H*W), (N, c_cls, H*W),
    (N, c_dir, H*W) -- i.e. the flattened NCHW outputs of conv_box / conv_cls /
    conv_dir_cls.
    """
    N, C, H, W = x_nchw.shape
    HW = H * W
    c_box, c_cls, c_dir = w_box.shape[0], w_cls.shape[0], w_dir.shape[0]

    x3 = x_nchw.reshape(N, C, HW)  # pure view: NCHW already has HW contiguous/last

    if HW <= max_tile_hw:
        # Whole spatial extent fits one tile; block == full dim (no (8,128)
        # divisibility requirement, no padding, no pipeline overhead).
        tile_hw = HW
        hw_pad = HW
    else:
        # Large feature maps: big lane-dense tiles (multiple of 128), pad the
        # spatial axis up to a tile multiple for robustness (e.g. 200x176).
        tile_hw = max_tile_hw
        hw_pad = pl.cdiv(HW, tile_hw) * tile_hw
        if hw_pad != HW:
            x3 = jnp.pad(x3, ((0, 0), (0, 0), (0, hw_pad - HW)))

    grid = (N, hw_pad // tile_hw)

    x_map = lambda n, h: (n, 0, h)
    const_map = lambda n, h: (0, 0)
    out_map = lambda n, h: (n, 0, h)

    out_box, out_cls, out_dir = pl.pallas_call(
        _heads_kernel,
        out_shape=(
            jax.ShapeDtypeStruct((N, c_box, hw_pad), x_nchw.dtype),
            jax.ShapeDtypeStruct((N, c_cls, hw_pad), x_nchw.dtype),
            jax.ShapeDtypeStruct((N, c_dir, hw_pad), x_nchw.dtype),
        ),
        grid_spec=pltpu.PrefetchScalarGridSpec(
            num_scalar_prefetch=0,
            grid=grid,
            in_specs=[
                pl.BlockSpec((None, C, tile_hw), x_map),   # activations tile
                pl.BlockSpec((c_box, C), const_map),       # conv_box weight
                pl.BlockSpec((c_box, 1), const_map),       # conv_box bias
                pl.BlockSpec((c_cls, C), const_map),       # conv_cls weight
                pl.BlockSpec((c_cls, 1), const_map),       # conv_cls bias
                pl.BlockSpec((c_dir, C), const_map),       # conv_dir_cls weight
                pl.BlockSpec((c_dir, 1), const_map),       # conv_dir_cls bias
            ],
            out_specs=(
                pl.BlockSpec((None, c_box, tile_hw), out_map),
                pl.BlockSpec((None, c_cls, tile_hw), out_map),
                pl.BlockSpec((None, c_dir, tile_hw), out_map),
            ),
        ),
        compiler_params=pltpu.CompilerParams(
            dimension_semantics=("parallel", "parallel"),
        ),
    )(x3, w_box, b_box, w_cls, b_cls, w_dir, b_dir)

    if hw_pad != HW:
        out_box = out_box[:, :, :HW]
        out_cls = out_cls[:, :, :HW]
        out_dir = out_dir[:, :, :HW]
    return out_box, out_cls, out_dir


class SSDRotateHeadPallas:
    """JAX/Pallas port of SSDRotateHead.forward (synthetic deterministic init)."""

    def __init__(
        self,
        num_class=1,
        num_output_filters=32,
        num_anchor_per_loc=2,
        use_sigmoid_cls=True,
        use_direction_classifier=True,
        box_code_size=7,
        key=None,
    ):
        num_anchor_per_loc *= num_class
        self._num_class = num_class if use_sigmoid_cls else num_class + 1
        self._num_anchor_per_loc = num_anchor_per_loc
        self._use_direction_classifier = use_direction_classifier
        self._box_code_size = box_code_size
        self._num_output_filters = num_output_filters

        self.c_box = num_anchor_per_loc * box_code_size          # 14
        self.c_cls = num_anchor_per_loc * self._num_class        # 2
        self.c_dir = num_anchor_per_loc * 2                      # 4

        key = jax.random.PRNGKey(42) if key is None else key
        k = jax.random.split(key, 6)
        scale = 1.0 / jnp.sqrt(jnp.float32(num_output_filters))

        # Weights stored as (cout, C): the exact orientation the kernel consumes
        # ((cout, C) @ (C, HW_tile)), so forward() does no per-call layout work.
        def _w(kk, cout):
            return jax.random.uniform(
                kk, (cout, num_output_filters), jnp.float32, -scale, scale
            )

        def _b(kk, cout):
            return jax.random.uniform(kk, (cout,), jnp.float32, -scale, scale)

        self.w_box, self.b_box = _w(k[0], self.c_box), _b(k[1], self.c_box)
        self.w_cls, self.b_cls = _w(k[2], self.c_cls), _b(k[3], self.c_cls)
        self.w_dir, self.b_dir = _w(k[4], self.c_dir), _b(k[5], self.c_dir)

        # Kernel-ready column biases, hoisted out of forward().
        self._b_box_col = self.b_box.reshape(self.c_box, 1)
        self._b_cls_col = self.b_cls.reshape(self.c_cls, 1)
        self._b_dir_col = self.b_dir.reshape(self.c_dir, 1)

    def _to_preds(self, y_nc_hw, N, H, W, cout):
        # y_nc_hw: (N, cout, H*W) == flattened NCHW conv output.
        # PyTorch: (N, cout, H, W).view(N, nc, cout//nc, H, W).permute(0,1,3,4,2)
        nc = self._num_class
        per = cout // nc
        y = y_nc_hw.reshape(N, nc, per, H, W)
        return jnp.transpose(y, (0, 1, 3, 4, 2))  # (N, nc, H, W, per)

    def forward(self, x):
        N, C, H, W = x.shape
        assert C == self._num_output_filters
        o_box, o_cls, o_dir = fused_1x1_conv_heads(
            x,
            self.w_box, self._b_box_col,
            self.w_cls, self._b_cls_col,
            self.w_dir, self._b_dir_col,
        )
        box_preds = self._to_preds(o_box, N, H, W, self.c_box)
        cls_preds = self._to_preds(o_cls, N, H, W, self.c_cls)
        dir_cls_preds = (
            self._to_preds(o_dir, N, H, W, self.c_dir)
            if self._use_direction_classifier
            else None
        )
        return box_preds, cls_preds, dir_cls_preds

    # Plain-JAX reference of the same forward pass (for correctness check).
    def forward_ref(self, x):
        N, C, H, W = x.shape

        def head(w, b, cout):
            y = jnp.einsum("oc,nchw->nohw", w, x) + b[None, :, None, None]
            return self._to_preds(y.reshape(N, cout, H * W), N, H, W, cout)

        return (
            head(self.w_box, self.b_box, self.c_box),
            head(self.w_cls, self.b_cls, self.c_cls),
            head(self.w_dir, self.b_dir, self.c_dir),
        )


if __name__ == "__main__":
    # Small shapes: batch=2, channels(num_output_filters)=32, spatial 8x8.
    key = jax.random.PRNGKey(0)
    x = jax.random.normal(key, (2, 32, 8, 8), dtype=jnp.float32)

    head = SSDRotateHeadPallas(
        num_class=1,
        num_output_filters=32,
        num_anchor_per_loc=2,
        use_sigmoid_cls=True,
        use_direction_classifier=True,
        box_code_size=7,
        key=jax.random.PRNGKey(1),
    )

    box_preds, cls_preds, dir_cls_preds = head.forward(x)
    jax.block_until_ready((box_preds, cls_preds, dir_cls_preds))

    # Shape checks (must match PyTorch semantics: (N, num_class, H, W, -1)).
    assert box_preds.shape == (2, 1, 8, 8, 14), box_preds.shape
    assert cls_preds.shape == (2, 1, 8, 8, 2), cls_preds.shape
    assert dir_cls_preds.shape == (2, 1, 8, 8, 4), dir_cls_preds.shape

    # Numerical check vs. plain-JAX reference.
    ref_box, ref_cls, ref_dir = head.forward_ref(x)
    assert jnp.allclose(box_preds, ref_box, atol=1e-5, rtol=1e-5)
    assert jnp.allclose(cls_preds, ref_cls, atol=1e-5, rtol=1e-5)
    assert jnp.allclose(dir_cls_preds, ref_dir, atol=1e-5, rtol=1e-5)

    print("KERNEL_OK")
</pallas_src>

<mosaic_0001>
module attributes {stable_mosaic.version = 11 : i64} {
  func.func @_heads_kernel(%arg0: i32, %arg1: i32, %arg2: memref<1x32x64xf32, #tpu.memory_space<vmem>>, %arg3: memref<14x32xf32, #tpu.memory_space<vmem>>, %arg4: memref<14x1xf32, #tpu.memory_space<vmem>>, %arg5: memref<2x32xf32, #tpu.memory_space<vmem>>, %arg6: memref<2x1xf32, #tpu.memory_space<vmem>>, %arg7: memref<4x32xf32, #tpu.memory_space<vmem>>, %arg8: memref<4x1xf32, #tpu.memory_space<vmem>>, %arg9: memref<1x14x64xf32, #tpu.memory_space<vmem>>, %arg10: memref<1x2x64xf32, #tpu.memory_space<vmem>>, %arg11: memref<1x4x64xf32, #tpu.memory_space<vmem>>) attributes {dimension_semantics = [#tpu.dimension_semantics<parallel>, #tpu.dimension_semantics<parallel>], iteration_bounds = array<i64: 2, 1>, scalar_prefetch = 0 : i64, scratch_operands = 0 : i64, tpu.core_type = #tpu.core_type<tc>, window_params = [{transform_indices = @transform_0, window_bounds = array<i64: 1, 32, 64>}, {pipeline_mode = #tpu.pipeline_mode<synchronous>, transform_indices = @transform_1, window_bounds = array<i64: 14, 32>}, {pipeline_mode = #tpu.pipeline_mode<synchronous>, transform_indices = @transform_2, window_bounds = array<i64: 14, 1>}, {pipeline_mode = #tpu.pipeline_mode<synchronous>, transform_indices = @transform_3, window_bounds = array<i64: 2, 32>}, {pipeline_mode = #tpu.pipeline_mode<synchronous>, transform_indices = @transform_4, window_bounds = array<i64: 2, 1>}, {pipeline_mode = #tpu.pipeline_mode<synchronous>, transform_indices = @transform_5, window_bounds = array<i64: 4, 32>}, {pipeline_mode = #tpu.pipeline_mode<synchronous>, transform_indices = @transform_6, window_bounds = array<i64: 4, 1>}, {transform_indices = @transform_7, window_bounds = array<i64: 1, 14, 64>}, {transform_indices = @transform_8, window_bounds = array<i64: 1, 2, 64>}, {transform_indices = @transform_9, window_bounds = array<i64: 1, 4, 64>}]} {
    %c0 = arith.constant 0 : index
    %c0_0 = arith.constant 0 : index
    %c0_1 = arith.constant 0 : index
    %0 = vector.load %arg2[%c0, %c0_0, %c0_1] : memref<1x32x64xf32, #tpu.memory_space<vmem>>, vector<1x32x64xf32>
    %1 = vector.shape_cast %0 : vector<1x32x64xf32> to vector<32x64xf32>
    %c0_2 = arith.constant 0 : index
    %c0_3 = arith.constant 0 : index
    %2 = vector.load %arg3[%c0_2, %c0_3] : memref<14x32xf32, #tpu.memory_space<vmem>>, vector<14x32xf32>
    %cst = arith.constant dense<0.000000e+00> : vector<14x64xf32>
    %3 = tpu.matmul %2, %1, %cst {dimension_numbers = #tpu.dot_dimension_numbers<[1], [0], [0], [1], [0, 0, 1, 1], [], []>} : vector<14x32xf32>, vector<32x64xf32>, vector<14x64xf32> -> vector<14x64xf32>
    %c0_4 = arith.constant 0 : index
    %c0_5 = arith.constant 0 : index
    %4 = vector.load %arg4[%c0_4, %c0_5] : memref<14x1xf32, #tpu.memory_space<vmem>>, vector<14x1xf32>
    %5 = vector.broadcast %4 : vector<14x1xf32> to vector<14x64xf32>
    %6 = arith.addf %3, %5 : vector<14x64xf32>
    %c0_6 = arith.constant 0 : index
    %c0_7 = arith.constant 0 : index
    %c0_8 = arith.constant 0 : index
    %7 = vector.load %arg9[%c0_6, %c0_7, %c0_8] : memref<1x14x64xf32, #tpu.memory_space<vmem>>, vector<1x14x64xf32>
    %8 = vector.shape_cast %7 : vector<1x14x64xf32> to vector<14x64xf32>
    %9 = vector.shape_cast %6 : vector<14x64xf32> to vector<1x14x64xf32>
    tpu.vector_store %arg9[%c0_6, %c0_7, %c0_8], %9 {strides = array<i32>} : memref<1x14x64xf32, #tpu.memory_space<vmem>>, vector<1x14x64xf32>,
    %c0_9 = arith.constant 0 : index
    %c0_10 = arith.constant 0 : index
    %10 = vector.load %arg5[%c0_9, %c0_10] : memref<2x32xf32, #tpu.memory_space<vmem>>, vector<2x32xf32>
    %cst_11 = arith.constant dense<0.000000e+00> : vector<2x64xf32>
    %11 = tpu.matmul %10, %1, %cst_11 {dimension_numbers = #tpu.dot_dimension_numbers<[1], [0], [0], [1], [0, 0, 1, 1], [], []>} : vector<2x32xf32>, vector<32x64xf32>, vector<2x64xf32> -> vector<2x64xf32>
    %c0_12 = arith.constant 0 : index
    %c0_13 = arith.constant 0 : index
    %12 = vector.load %arg6[%c0_12, %c0_13] : memref<2x1xf32, #tpu.memory_space<vmem>>, vector<2x1xf32>
    %13 = vector.broadcast %12 : vector<2x1xf32> to vector<2x64xf32>
    %14 = arith.addf %11, %13 : vector<2x64xf32>
    %c0_14 = arith.constant 0 : index
    %c0_15 = arith.constant 0 : index
    %c0_16 = arith.constant 0 : index
    %15 = vector.load %arg10[%c0_14, %c0_15, %c0_16] : memref<1x2x64xf32, #tpu.memory_space<vmem>>, vector<1x2x64xf32>
    %16 = vector.shape_cast %15 : vector<1x2x64xf32> to vector<2x64xf32>
    %17 = vector.shape_cast %14 : vector<2x64xf32> to vector<1x2x64xf32>
    tpu.vector_store %arg10[%c0_14, %c0_15, %c0_16], %17 {strides = array<i32>} : memref<1x2x64xf32, #tpu.memory_space<vmem>>, vector<1x2x64xf32>,
    %c0_17 = arith.constant 0 : index
    %c0_18 = arith.constant 0 : index
    %18 = vector.load %arg7[%c0_17, %c0_18] : memref<4x32xf32, #tpu.memory_space<vmem>>, vector<4x32xf32>
    %cst_19 = arith.constant dense<0.000000e+00> : vector<4x64xf32>
    %19 = tpu.matmul %18, %1, %cst_19 {dimension_numbers = #tpu.dot_dimension_numbers<[1], [0], [0], [1], [0, 0, 1, 1], [], []>} : vector<4x32xf32>, vector<32x64xf32>, vector<4x64xf32> -> vector<4x64xf32>
    %c0_20 = arith.constant 0 : index
    %c0_21 = arith.constant 0 : index
    %20 = vector.load %arg8[%c0_20, %c0_21] : memref<4x1xf32, #tpu.memory_space<vmem>>, vector<4x1xf32>
    %21 = vector.broadcast %20 : vector<4x1xf32> to vector<4x64xf32>
    %22 = arith.addf %19, %21 : vector<4x64xf32>
    %c0_22 = arith.constant 0 : index
    %c0_23 = arith.constant 0 : index
    %c0_24 = arith.constant 0 : index
    %23 = vector.load %arg11[%c0_22, %c0_23, %c0_24] : memref<1x4x64xf32, #tpu.memory_space<vmem>>, vector<1x4x64xf32>
    %24 = vector.shape_cast %23 : vector<1x4x64xf32> to vector<4x64xf32>
    %25 = vector.shape_cast %22 : vector<4x64xf32> to vector<1x4x64xf32>
    tpu.vector_store %arg11[%c0_22, %c0_23, %c0_24], %25 {strides = array<i32>} : memref<1x4x64xf32, #tpu.memory_space<vmem>>, vector<1x4x64xf32>,
    return
  }
  func.func @transform_0(%arg0: i32, %arg1: i32) -> (i32, i32, i32) {
    %c0_i32 = arith.constant 0 : i32
    %c0_i32_0 = arith.constant 0 : i32
    return %arg0, %c0_i32, %arg1 : i32, i32, i32
  }
  func.func @transform_1(%arg0: i32, %arg1: i32) -> (i32, i32) {
    %c0_i32 = arith.constant 0 : i32
    %c0_i32_0 = arith.constant 0 : i32
    %c0_i32_1 = arith.constant 0 : i32
    return %c0_i32, %c0_i32_0 : i32, i32
  }
  func.func @transform_2(%arg0: i32, %arg1: i32) -> (i32, i32) {
    %c0_i32 = arith.constant 0 : i32
    %c0_i32_0 = arith.constant 0 : i32
    %c0_i32_1 = arith.constant 0 : i32
    return %c0_i32, %c0_i32_0 : i32, i32
  }
  func.func @transform_3(%arg0: i32, %arg1: i32) -> (i32, i32) {
    %c0_i32 = arith.constant 0 : i32
    %c0_i32_0 = arith.constant 0 : i32
    %c0_i32_1 = arith.constant 0 : i32
    return %c0_i32, %c0_i32_0 : i32, i32
  }
  func.func @transform_4(%arg0: i32, %arg1: i32) -> (i32, i32) {
    %c0_i32 = arith.constant 0 : i32
    %c0_i32_0 = arith.constant 0 : i32
    %c0_i32_1 = arith.constant 0 : i32
    return %c0_i32, %c0_i32_0 : i32, i32
  }
  func.func @transform_5(%arg0: i32, %arg1: i32) -> (i32, i32) {
    %c0_i32 = arith.constant 0 : i32
    %c0_i32_0 = arith.constant 0 : i32
    %c0_i32_1 = arith.constant 0 : i32
    return %c0_i32, %c0_i32_0 : i32, i32
  }
  func.func @transform_6(%arg0: i32, %arg1: i32) -> (i32, i32) {
    %c0_i32 = arith.constant 0 : i32
    %c0_i32_0 = arith.constant 0 : i32
    %c0_i32_1 = arith.constant 0 : i32
    return %c0_i32, %c0_i32_0 : i32, i32
  }
  func.func @transform_7(%arg0: i32, %arg1: i32) -> (i32, i32, i32) {
    %c0_i32 = arith.constant 0 : i32
    %c0_i32_0 = arith.constant 0 : i32
    return %arg0, %c0_i32, %arg1 : i32, i32, i32
  }
  func.func @transform_8(%arg0: i32, %arg1: i32) -> (i32, i32, i32) {
    %c0_i32 = arith.constant 0 : i32
    %c0_i32_0 = arith.constant 0 : i32
    return %arg0, %c0_i32, %arg1 : i32, i32, i32
  }
  func.func @transform_9(%arg0: i32, %arg1: i32) -> (i32, i32, i32) {
    %c0_i32 = arith.constant 0 : i32
    %c0_i32_0 = arith.constant 0 : i32
    return %arg0, %c0_i32, %arg1 : i32, i32, i32
  }
}

</mosaic_0001>

<bundles_post_ra>
// kernel: tpu_custom_call.1
= control target key start
LH: loop header
LB: loop body
LE: loop exit
PB: predicated region body
PF: predicated region fallthrough
CT: control target
= control target key end

     0   :  { %s1485_s0 = inlined_call_operand.hbm [shape: f32[2,32,64], index: 0, kind: input, shape index: {}]   ;;  %s1486_s1 = inlined_call_operand.vmem [shape: f32[14,32], index: 1, kind: input, shape index: {}]   ;;  %s1487_s2 = inlined_call_operand.vmem [shape: f32[14,1], index: 2, kind: input, shape index: {}]   ;;  %s1488_s3 = inlined_call_operand.vmem [shape: f32[2,32], index: 3, kind: input, shape index: {}]   ;;  %s1489_s4 = inlined_call_operand.vmem [shape: f32[2,1], index: 4, kind: input, shape index: {}]   ;;  %s1490_s5 = inlined_call_operand.vmem [shape: f32[4,32], index: 5, kind: input, shape index: {}]   ;;  %s1491_s6 = inlined_call_operand.vmem [shape: f32[4,1], index: 6, kind: input, shape index: {}]   ;;  %s1492_s7 = inlined_call_operand.vmem [shape: f32[2,14,64], index: 7, kind: output, shape index: {0}]   ;;  %s1493_s8 = inlined_call_operand.hbm [shape: f32[2,2,64], index: 8, kind: output, shape index: {1}]   ;;  %s1494_s9 = inlined_call_operand.hbm [shape: f32[2,4,64], index: 9, kind: output, shape index: {2}]  }
   0x1   :  { %1497 = sst [smem:[#allocation12_spill]] %s1485_s0 }
   0x2   :  { %15 = vsyncpa [#allocation3], 0 }
   0x3   :  { %17 = vsyncpa [#allocation3 + $0x1], 0 }
   0x4   :  { %18 = vsyncpa [#allocation4], 0 }
   0x5   :  { %20 = vsyncpa [#allocation4 + $0x1], 0 }
   0x6   :  { %21 = vsyncpa [#allocation7], 0 }
   0x7   :  { %23 = vsyncpa [#allocation7 + $0x1], 0  ;;  %s1238_s30 = smov 0   ;;  %s1240_s10 = smov 0  }
   0x8   :  { %s1242_s11 = smov 0   ;;  %s1244_s12 = smov 0  }
   0x9   :  { %s1246_s13 = smov 0   ;;  %s1248_s14 = smov 0  }
   0xa LB: > { %s864_s15 = sadd.s32 4294967295, %s1177_s14   ;;  %s865_s16 = sadd.s32 4294967294, %s1177_s14   ;;  %s1177_s14 = sphi %s1248_s14, %s29_s14   ;;  %s1173_s13 = sphi %s1246_s13, %s1515_s13   ;;  %s1169_s12 = sphi %s1244_s12, %s1514_s12   ;;  %s1165_s11 = sphi %s1242_s11, %s1513_s11   ;;  %s1161_s10 = sphi %s1240_s10, %s1512_s10   ;;  %s1157_s30 = sphi %s1238_s30, %s1511_s30  }
   0xb   : > { %s41_s17 = sadd.s32 1, %s1173_s13  ;;  %s50_s18 = sadd.s32 1, %s1165_s11 }
   0xc   : > { %p43_p0 = scmp.ge.s32.totalorder %s41_s17, 2  ;;  %p57_p1 = scmp.ne.s32.totalorder %s1165_s11, %s1161_s10 }
   0xd   : > { %p58_p2 = scmp.eq.s32.totalorder %s1177_s14, 0  ;;  %p63_p3 = scmp.ne.s32.totalorder %s1161_s10, %s1157_s30 }
   0xe   : > { %s1517_s17 = smov (%p43_p0, %s41_s17), 0  ;;  %p64_p5 = scmp.eq.s32.totalorder %s864_s15, 0 }
   0xf   : > { %1498 = sst [smem:[#allocation11_spill]] %s1517_s17  ;;  %p1279_p4 = por %p58_p2, %p57_p1 }
  0x10   : > { %s45_s20 = ssub.s32 %s1173_s13, %s1517_s17  ;;  %p243_p6 = scmp.eq.s32.totalorder %s864_s15, 1 }
  0x11   : > { %p48_p7 = scmp.eq.s32.totalorder %s45_s20, 0  ;;  %p1285_p8 = por %p64_p5, %p63_p3 }
  0x12   : > { %p1289_p9 = por %p243_p6, %p57_p1  ;;  %p249_p10 = scmp.eq.s32.totalorder %s865_s16, 1 }
  0x13   : > { %s1294_s23 = scalar_select %p48_p7, %s1165_s11, %s50_s18  }
  0x14   : > { %s1501_s22 = scalar_select %p1289_p9, 1, 0 }
  0x15   : > { %p1296_p11 = por %p249_p10, %p63_p3  ;;  %p975_p13 = scmp.lt.s32.totalorder %s1177_s14, 2 }
  0x16   : > { %s315_s25 = sand.u32 1, %s1165_s11   ;;  %s887_s27 = sshll.u32 %s1173_s13, 9 }
  0x17   : > { %s1502_s24 = scalar_select %p1296_p11, 1, 0 }
  0x18   : > { %s868_s26 = sshll.u32 %s315_s25, 5  ;;  %s1503_s0 = sld [smem:[#allocation12_spill]] }
  0x19   : > { %s319_s16 = scalar_lea.vmem [#allocation2], %s868_s26  ;;  %p1313_p0 = pnand %p975_p13, %p1279_p4 }
  0x1a   : > { %s327_s18 = sshll.u32 %s319_s16, 4  ;;  %s1318_s17 = scalar_lea.sflag [#allocation3], %s315_s25  ;;  %s1309_s18 = int_to_ptr.vmem [resolvable:$true] %s327_s18 }
  0x1b   : > { %p1035_p3 = pneg %p1313_p0 }
  0x1e   : > { %s1307_s15 = scalar_lea.hbm %s1503_s0, %s887_s27  ;;  %s1038_s19 = scalar_lea.hbm %s1503_s0, 1024 }
  0x1f   : > { %s1033_s27 = scalar_lea.hbm %s1307_s15, 512  ;;  %p1039_p4 = scmp.lt.u32.totalorder %s1307_s15, %s1503_s0 }
  0x20   : > { %p1034_p2 = scmp.ne.s32.totalorder %s1307_s15, %s1033_s27  ;;  %p1040_p7 = scmp.lt.u32.totalorder %s1038_s19, %s1033_s27 }
  0x21   : > { %p1042_p13 = scmp.lt.u32.totalorder %s1033_s27, %s1307_s15 }
  0x22   : > { %p1036_p5 = pnand %p1035_p3, %p1034_p2  ;;  %p1041_p10 = por %p1040_p7, %p1039_p4 }
  0x24   : > { %p1037_p6 = pneg %p1036_p5  ;;  %p1043_p12 = por %p1042_p13, %p1041_p10 }
  0x26   : > { %p1044_p1 = pnand %p1043_p12, %p1037_p6 }
  0x28   : > { %1047 = shalt.err (!%p1044_p1)
}
  0x29   : > { %s1048_s25 = scalar_lea.vmem %s1309_s18, 512  ;;  %s1179_s26 = smov [#allocation2]  }
  0x2a   : > { %p1049_p2 = scmp.ne.s32.totalorder %s1309_s18, %s1048_s25  ;;  %s1053_s28 = sshll.u32 %s1179_s26, 4  ;;  %s1054_s28 = int_to_ptr.vmem [resolvable:$false] %s1053_s28 }
  0x2b   : > { %s1055_s29 = scalar_lea.vmem %s1054_s28, 1024  ;;  %p1056_p9 = scmp.lt.s32.totalorder %s1309_s18, %s1054_s28 }
  0x2c   : > { %p1051_p5 = pnand %p1049_p2, %p1035_p3  ;;  %p1057_p4 = scmp.lt.s32.totalorder %s1055_s29, %s1048_s25 }
  0x2e   : > { %p1052_p11 = pneg %p1051_p5  ;;  %p1058_p7 = por %p1057_p4, %p1056_p9 }
  0x30   : > { %p1059_p10 = pnand %p1058_p7, %p1052_p11 }
  0x32   : > { %1062 = shalt.err (!%p1059_p10)
}
  0x33   : > { %s1180_s27 = smov 128   ;;  %s1181_s19 = smov 8  }
  0x34   : > { %967 = dma.hbm_to_vmem [thread:$0]  (!%p1313_p0), %s1307_s15, 512, %s1309_s18, %s1318_s17, %s1180_s27, %s1180_s27, %s1181_s19  }
  0x35   : > { %p335_p12 = scmp.lt.s32.totalorder %s1177_s14, 3  ;;  %p1505_p1 = scmp.ge.s32.totalorder %s1177_s14, 1 }
  0x37   : > { %p336_p3 = pnand %p1505_p1, %p335_p12 }
  0x38   : > { %s1350_s16 = sand.u32 (!%p336_p3), 1, %s1161_s10  }
  0x39   : > { %339 = sbr.rel (%p336_p3) target bundleno = 330 (0x14a), region = 48  ;;  %s872_s25 = sshll.u32 (!%p336_p3), %s1350_s16, 5 }
  0x3a   : > { %s342_s26 = scalar_lea.sflag (!%p336_p3), [#allocation3], %s1350_s16  ;;  %s345_s28 = scalar_lea.vmem (!%p336_p3), [#allocation2], %s872_s25 }
  0x40   : > { %1144 = dma.done.wait (%p1285_p8), %s342_s26, 512  }
  0x41   : > { %1146 = vsyncadd (%p1285_p8), %s342_s26, 4294966784  ;;  %v1182_v0 = vmov 0.0|0.0   ;;  %vm1183_vm0 = vmmov 0   ;;  %v1184_v1 = vmov 0.0   ;;  %v1185_v2 = vmov 0   ;;  %v401_v3 = vld [vmem:[%s345_s28] sm:$0xff] }
  0x42   : > { %946 = vmatprep.subr.bf16.mxu1 %v1182_v0  ;;  %924 = vmatprep.mubr.msk.f32.mxu1 %vm1183_vm0, %v1184_v1  ;;  %vm419_vm1 = vcmask 261120   ;;  %v402_v4 = vld [vmem:[%s345_s28 + $0x8] sm:$0xff]  ;;  %v403_v5 = vld [vmem:[%s345_s28 + $0x10] sm:$0xff]  ;;  %v404_v7 = vld [vmem:[%s345_s28 + $0x18] sm:$0xff]  ;;  %p393_p8 = scmp.lt.s32.totalorder %s1169_s12, 1  ;;  %s873_s27 = sshll.u32 %s1350_s16, 1 }
  0x43   : > { %1032 = vset.pattern.permute.xlu1 %v1185_v2  ;;  %1031 = vset.pattern.permute.xlu0 %v1185_v2  ;;  %v938_v6 = vpack.c.bf16 %v402_v4, %v401_v3  ;;  %v405_v8 = vld [vmem:[%s1486_s1] sm:$0xff]  ;;  %v942_v9 = vpack.c.bf16 %v404_v7, %v403_v5  ;;  %v408_v12 = vld [vmem:[%s1487_s2 + $0x8] sm:$0x3f]  ;;  %s883_s25 = sshll.u32 %s1169_s12, 5  ;;  %s385_s26 = scalar_lea.vmem [#allocation5], %s873_s27  ;;  %vm585_vm2 = vcmask 517120  }
  0x44   : > { %913 = vmatprep.mubr.msk.f32.mxu0 %vm419_vm1, %v405_v8  ;;  %v407_v10 = vld [vmem:[%s1487_s2] sm:$0xff]  ;;  %v406_v15 = vld [vmem:[%s1486_s1 + $0x8] sm:$0x3f]  ;;  %s394_s29 = scalar_select %p393_p8, %s1169_s12, 1  ;;  %vm503_vm3 = vcmask 521216   ;;  %vm501_vm4 = vcmask 523264  }
  0x45   : > { %939 = vmatprep.subr.bf16.mxu0 %v938_v6  ;;  %948 = vmatpush3.bf16.msra.mxu1 %v938_v6  ;;  %v506_v11 = vld [vmem:[%s1489_s4] sm:$0x3]  ;;  %s700_s28 = sshll.u32 %s385_s26, 4  ;;  %s1401_s27 = scalar_lea.hbm %s1493_s8, %s883_s25  ;;  %s1403_s28 = int_to_ptr.vmem [resolvable:$true] %s700_s28 }
  0x46   : > { %941 = vmatpush3.bf16.msra.mxu0 %v938_v6  ;;  %949 = vmatprep.subr.bf16.mxu1 %v1182_v0  ;;  %v505_v13 = vld [vmem:[%s1488_s3] sm:$0x3]  ;;  %s888_s19 = sshll.u32 %s394_s29, 4  ;;  %s1063_s17 = scalar_lea.vmem %s1403_s28, 32 }
  0x47   : > { %943 = vmatprep.subr.bf16.mxu0 %v942_v9  ;;  %411 = vperm.xlu1 %1032, %v407_v10   ;;  %v588_v14 = vld [vmem:[%s1491_s6] sm:$0xf]  ;;  %s1395_s21 = scalar_lea.vmem %s1492_s7, %s888_s19  ;;  %s678_s19 = scalar_lea.sflag [#allocation4], %s1350_s16 }
  0x48   : > { %509 = vperm.xlu0 %1031, %v506_v11   ;;  %v587_v16 = vld [vmem:[%s1490_s5] sm:$0xf]  ;;  %p1064_p9 = scmp.ne.s32.totalorder %s1403_s28, %s1063_s17  ;;  %p1506_p11 = scmp.ne.s32.totalorder %s1501_s22, 0 }
  0x49   : > { %951 = vmatpush3.bf16.msra.mxu1 %v942_v9  ;;  %s1186_s15 = smov [#allocation5]  }
  0x4a   : > { %945 = vmatpush3.bf16.msra.mxu0 %v942_v9  ;;  %p1065_p0 = pnand %p1064_p9, %p1506_p11  ;;  %s1067_s25 = sshll.u32 %s1186_s15, 4  ;;  %s1068_s25 = int_to_ptr.vmem [resolvable:$false] %s1067_s25 }
  0x4b   : > { %952 = vmatprep.subr.bf16.mxu0 %v1182_v0  ;;  %416 = vperm.xlu1 %1032, %v408_v12   ;;  %s1069_s20 = scalar_lea.vmem %s1068_s25, 64  ;;  %p1070_p13 = scmp.lt.s32.totalorder %s1403_s28, %s1068_s25 }
  0x4c   : > { %925 = vmatmul.mubr.msk.f32.vlgmr.msra.gmra.mrb[0].mxu1 %vm419_vm1, %v505_v13  ;;  %591 = vperm.xlu0 %1031, %v588_v14   ;;  %p1066_p6 = pneg %p1065_p0  ;;  %p1071_p2 = scmp.lt.s32.totalorder %s1069_s20, %s1063_s17 }
  0x4d   : > { %914 = vmatmul.mubr.msk.f32.vlgmr.msra.gmra.mrb[0].mxu0 %vm419_vm1, %v406_v15 }
  0x4e   : > { %954 = vmatpush3.bf16.msra.mxu0 %v938_v6  ;;  %935 = vmatprep.mubr.msk.f32.mxu0 %vm1183_vm0, %v1184_v1  ;;  %p1072_p5 = por %p1071_p2, %p1070_p13 }
  0x4f   : > { %955 = vmatprep.subr.bf16.mxu0 %v1182_v0 }
  0x50   : > { %p1073_p4 = pnand %p1072_p5, %p1066_p6 }
  0x52   : > { %957 = vmatpush3.bf16.msra.mxu0 %v942_v9 }
  0x55   : > { %936 = vmatmul.mubr.msk.f32.vlgmr.msra.gmra.mrb[2].mxu0 %vm419_vm1, %v587_v16 }
  0xc6   : > { %v412_v17 = vpop.permute.xlu1 %411 }
  0xc7   : > { %v510_v19 = vpop.permute.xlu0 %509 }
  0xca   : > { %v417_v18 = vpop.permute.xlu1 %416 }
 0x11f   : > { %v581_v20 = vpop.f32.mrb[0].mxu1 }
 0x120   : > { %v915_v21 = vpop.f32.mrb[0].mxu0  ;;  %v582_v22 = vadd.f32 %v581_v20, %v510_v19  ;;  %v926_v23 = vpop.f32.mrb[1].mxu1 }
 0x121   : > { %v498_v24 = vadd.f32 %v915_v21, %v417_v18  ;;  %v492_v25 = vpop.f32.mrb[1].mxu0 }
 0x122   : > { %v493_v26 = vadd.f32 %v492_v25, %v412_v17  ;;  %586 = vst.msk [vmem:[%s385_s26] sm:$0x3] %vm585_vm2, %v582_v22 }
 0x123   : > { %504 = vst.msk [vmem:[%s1395_s21 + $0x8] sm:$0x3f] %vm503_vm3, %v498_v24 }
 0x124   : > { %1076 = shalt.err (!%p1073_p4)
}
 0x125   : > { %s1077_s26 = scalar_lea.hbm %s1401_s27, 32  ;;  %s1081_s15 = scalar_lea.hbm %s1493_s8, 64 }
 0x126   : > { %p1078_p7 = scmp.ne.s32.totalorder %s1401_s27, %s1077_s26  ;;  %p1082_p1 = scmp.lt.u32.totalorder %s1401_s27, %s1493_s8 }
 0x127   : > { %p1083_p3 = scmp.lt.u32.totalorder %s1081_s15, %s1077_s26  ;;  %p1085_p9 = scmp.lt.u32.totalorder %s1077_s26, %s1401_s27 }
 0x128   : > { %p1079_p10 = pnand %p1078_p7, %p1506_p11 }
 0x129   : > { %p1084_p8 = por %p1083_p3, %p1082_p1 }
 0x12a   : > { %p1080_p12 = pneg %p1079_p10 }
 0x12b   : > { %p1086_p0 = por %p1085_p9, %p1084_p8 }
 0x12d   : > { %p1087_p6 = pnand %p1086_p0, %p1080_p12 }
 0x12f   : > { %1090 = shalt.err (!%p1087_p6)
}
 0x130   : > { %960 = dma.vmem_to_hbm [thread:$0]  (%p1506_p11), %s1403_s28, 32, %s1401_s27, %s678_s19   ;;  %502 = vst.msk [vmem:[%s1395_s21] sm:$0xff] %vm501_vm4, %v493_v26  ;;  %v592_v27 = vpop.permute.xlu0 %591  ;;  %v663_v28 = vpop.f32.mrb[2].mxu0  ;;  %vm667_vm5 = vcmask 519168  }
 0x131   : > { %s884_s0 = sshll.u32 %s1169_s12, 6  ;;  %s1507_s18 = sshll.u32 %s1350_s16, 2  ;;  %v664_v29 = vadd.f32 %v663_v28, %v592_v27  ;;  %v937_v30 = vpop.f32.mrb[3].mxu0 }
 0x132   : > { %s392_s17 = scalar_lea.vmem [#allocation6], %s1507_s18  ;;  %s1436_s15 = scalar_lea.hbm %s1494_s9, %s884_s0 }
 0x133   : > { %s714_s20 = sshll.u32 %s392_s17, 4  ;;  %668 = vst.msk [vmem:[%s392_s17] sm:$0xf] %vm667_vm5, %v664_v29  ;;  %s683_s12 = scalar_lea.sflag [#allocation7], %s1350_s16  ;;  %s1438_s20 = int_to_ptr.vmem [resolvable:$true] %s714_s20 }
 0x134   : > { %s1091_s28 = scalar_lea.vmem %s1438_s20, 64  ;;  %s1187_s21 = smov [#allocation6]  }
 0x135   : > { %p1092_p13 = scmp.ne.s32.totalorder %s1438_s20, %s1091_s28  ;;  %s1095_s27 = sshll.u32 %s1187_s21, 4  ;;  %s1096_s27 = int_to_ptr.vmem [resolvable:$false] %s1095_s27 }
 0x136   : > { %s1097_s19 = scalar_lea.vmem %s1096_s27, 128  ;;  %p1098_p4 = scmp.lt.s32.totalorder %s1438_s20, %s1096_s27 }
 0x137   : > { %p1093_p2 = pnand %p1092_p13, %p1506_p11  ;;  %p1099_p7 = scmp.lt.s32.totalorder %s1097_s19, %s1091_s28 }
 0x139   : > { %p1094_p5 = pneg %p1093_p2  ;;  %p1100_p10 = por %p1099_p7, %p1098_p4 }
 0x13b   : > { %p1101_p12 = pnand %p1100_p10, %p1094_p5 }
 0x13d   : > { %1104 = shalt.err (!%p1101_p12)
}
 0x13e   : > { %s1105_s16 = scalar_lea.hbm %s1436_s15, 64  ;;  %s1109_s18 = scalar_lea.hbm %s1494_s9, 128 }
 0x13f   : > { %p1106_p1 = scmp.ne.s32.totalorder %s1436_s15, %s1105_s16  ;;  %p1110_p9 = scmp.lt.u32.totalorder %s1436_s15, %s1494_s9 }
 0x140   : > { %p1111_p0 = scmp.lt.u32.totalorder %s1109_s18, %s1105_s16  ;;  %p1113_p13 = scmp.lt.u32.totalorder %s1105_s16, %s1436_s15 }
 0x141   : > { %p1107_p3 = pnand %p1106_p1, %p1506_p11 }
 0x142   : > { %p1112_p6 = por %p1111_p0, %p1110_p9 }
 0x143   : > { %p1108_p8 = pneg %p1107_p3 }
 0x144   : > { %p1114_p2 = por %p1113_p13, %p1112_p6 }
 0x146   : > { %p1115_p5 = pnand %p1114_p2, %p1108_p8 }
 0x148   : > { %1118 = shalt.err (!%p1115_p5)
}
 0x149   : > { %961 = dma.vmem_to_hbm [thread:$0]  (%p1506_p11), %s1438_s20, 64, %s1436_s15, %s683_s12  }
 0x14a PF: > { %s737_s29 = sand.u32 1, %s1157_s30   ;;  %p1508_p4 = scmp.ne.s32.totalorder %s1502_s24, 0 }
 0x14b   : > { %p1509_p7 = scmp.ge.s32.totalorder %s1177_s14, 2  ;;  %s738_s28 = scalar_lea.sflag [#allocation4], %s737_s29 }
 0x14d   : > { %p969_p10 = pnand %p1509_p7, %p1508_p4 }
 0x14f   : > { %1148 = dma.done.wait (!%p969_p10), %s738_s28, 32  }
 0x150   : > { %1150 = vsyncadd (!%p969_p10), %s738_s28, 4294967264  ;;  %s747_s21 = scalar_lea.sflag [#allocation7], %s737_s29 }
 0x151   : > { %1152 = dma.done.wait (!%p969_p10), %s747_s21, 64  }
 0x152   : > { %1154 = vsyncadd (!%p969_p10), %s747_s21, 4294967232  ;;  %s29_s14 = sadd.s32 1, %s1177_s14   ;;  %s1510_s22 = sld [smem:[#allocation11_spill]] }
 0x153   : > { %p26_p12 = scmp.ge.s32.totalorder %s29_s14, 4   ;;  %s1511_s30 = smov %s1161_s10 }
 0x154   : > { %s1512_s10 = smov %s1165_s11  ;;  %s1513_s11 = smov %s1294_s23 }
 0x155   : > { %s1514_s12 = smov %s1173_s13  ;;  %28 = sbr.rel (!%p26_p12) target bundleno = 10 (0xa), region = 122 }
 0x158   : > { %s1515_s13 = smov %s1510_s22 }
 0x15c   :  { %752 = vsyncpa [#allocation3], 1 }
 0x15d   :  { %754 = vsyncpa [#allocation3 + $0x1], 1 }
 0x15e   :  { %755 = vsyncpa [#allocation4], 1 }
 0x15f   :  { %757 = vsyncpa [#allocation4 + $0x1], 1 }
 0x160   :  { %758 = vsyncpa [#allocation7], 1 }
 0x161   :  { %760 = vsyncpa [#allocation7 + $0x1], 1 }

</bundles_post_ra>
